<compile_context>
chip_gen: v7x
topology: tpu7x:2x2x1
jax: 0.10.0
libtpu: 0.0.40
codegen_flags: <defaults>
</compile_context>

<pallas_src>
import functools

import jax
import jax.numpy as jnp
from jax.experimental import pallas as pl
from jax.experimental.pallas import tpu as pltpu

BN_EPS = 1e-5
LANE = 128              # lane width / feature-tile granularity
_MXU_STATS_MIN_B = 64   # switch batch reductions onto the MXU above this B


def _round_up(v, m):
    return ((v + m - 1) // m) * m


def _num_tensorcores():
    """2 on v7x (2 TensorCores/chip), else 1.  Best-effort device_kind sniff."""
    try:
        kind = jax.devices()[0].device_kind.lower()
    except Exception:  # pragma: no cover - defensive
        return 1
    return 2 if ("v7" in kind or "7x" in kind) else 1


def _choose_tile_o(o_pad, n_cores):
    """Feature-tile width: full width on 1-core chips, >=2 tiles on 2-core."""
    if n_cores >= 2 and o_pad >= 2 * LANE:
        t = (o_pad // 2 // LANE) * LANE
        while o_pad % t:          # make sure the tile divides o_pad exactly
            t -= LANE
        return t
    return o_pad


# --------------------------------------------------------------------------
# Parameter preparation (hoisted out of the per-call forward path).
# --------------------------------------------------------------------------
def prepare_residual_params(w_t, bias, gamma, beta, *, matmul_dtype=jnp.bfloat16):
    """Pad / cast the Residual parameters ONCE.

    w_t:  (i, o) = torch `fc.weight.T`
    bias: (o,)   accepted for API parity but unused -- with training-mode BN the
                 Linear bias cancels exactly against the batch-mean subtraction.
    gamma/beta: (o,) BatchNorm1d affine parameters.
    """
    del bias
    i, o = w_t.shape
    o_pad = _round_up(o, LANE)
    pad = o_pad - o
    # Padded columns have zero weight and zero gamma/beta -> exact zero outputs.
    w_p = jnp.pad(w_t.astype(jnp.float32), ((0, 0), (0, pad))).astype(matmul_dtype)
    g_p = jnp.pad(gamma.reshape(1, o).astype(jnp.float32), ((0, 0), (0, pad)))
    b_p = jnp.pad(beta.reshape(1, o).astype(jnp.float32), ((0, 0), (0, pad)))
    return {"w": w_p, "gamma": g_p, "beta": b_p, "i": i, "o": o}


# --------------------------------------------------------------------------
# Kernels
# --------------------------------------------------------------------------
def _compute_y_tile(x_ref, w_ref, g_ref, b_ref, o_ref):
    """One output-feature tile of Linear(bias-free) -> BN(train) -> ReLU."""
    x = x_ref[...]                                   # (B, i) f32
    w = w_ref[...]                                   # (i, T) bf16 (or f32)

    # MXU matmul: bf16 operands, f32 accumulation.  Bias elided (cancels).
    h = jnp.dot(x.astype(w.dtype), w, preferred_element_type=jnp.float32)  # (B, T)

    b = h.shape[0]
    if b >= _MXU_STATS_MIN_B:
        # Batch sums on the otherwise-idle MXU (frees VALU/XLU slots).
        ones_row = jnp.ones((1, b), jnp.float32)
        inv_b = jnp.float32(1.0 / b)
        mean = jnp.dot(ones_row, h, preferred_element_type=jnp.float32) * inv_b
        centered = h - mean
        var = jnp.dot(ones_row, centered * centered,
                      preferred_element_type=jnp.float32) * inv_b
    else:
        mean = jnp.mean(h, axis=0, keepdims=True)                    # (1, T)
        centered = h - mean
        var = jnp.mean(centered * centered, axis=0, keepdims=True)   # (1, T)

    # Folded BN affine applied to `centered` (no second stream of h, no `c`).
    a = g_ref[...] * jax.lax.rsqrt(var + BN_EPS)                     # (1, T)
    o_ref[...] = jnp.maximum(centered * a + b_ref[...], 0.0).astype(o_ref.dtype)


def _plain_kernel(x_ref, w_ref, g_ref, b_ref, o_ref):
    _compute_y_tile(x_ref, w_ref, g_ref, b_ref, o_ref)


def _fused_kernel(n_y, x_ref, w_ref, g_ref, b_ref, xt_ref, o_ref):
    """Grid steps [0, n_y): compute y tiles.  Steps >= n_y: copy x tiles."""
    j = pl.program_id(0)

    @pl.when(j < n_y)
    def _():
        _compute_y_tile(x_ref, w_ref, g_ref, b_ref, o_ref)

    @pl.when(j >= n_y)
    def _():
        # Pass-through tile: columns past the true array edge are masked on
        # write-back, so any padding garbage in xt_ref never reaches HBM.
        o_ref[...] = xt_ref[...].astype(o_ref.dtype)


# --------------------------------------------------------------------------
# Forward
# --------------------------------------------------------------------------
def residual_forward(x, params):
    """Residual.forward.  x: (B, i).  Returns (B, o + i) = cat([relu(bn(fc(x))), x], 1)."""
    B, i = x.shape
    assert i == params["i"], (i, params["i"])
    o = params["o"]
    w_p, g_p, b_p = params["w"], params["gamma"], params["beta"]
    o_pad = w_p.shape[1]

    tile_o = _choose_tile_o(o_pad, _num_tensorcores())
    n_y = o_pad // tile_o

    def _param_map(j):
        # Copy steps (fused path) clamp to the last valid W/gamma/beta block;
        # on compute steps this is the identity.
        return (0, jnp.minimum(j, n_y - 1))

    base_in_specs = [
        pl.BlockSpec((B, i), lambda j: (0, 0)),          # full batch, full i
        pl.BlockSpec((i, tile_o), _param_map),           # W column tile (bf16)
        pl.BlockSpec((1, tile_o), _param_map),           # gamma tile
        pl.BlockSpec((1, tile_o), _param_map),           # beta tile
    ]
    compiler_params = pltpu.CompilerParams(dimension_semantics=("parallel",))

    fused = (o == o_pad) and (o % tile_o == 0)
    if fused:
        # Single (B, o + i) output: y tiles followed by x-copy tiles.
        n_x = pl.cdiv(i, tile_o)
        in_specs = base_in_specs + [
            pl.BlockSpec((B, tile_o), lambda j: (0, jnp.maximum(j - n_y, 0))),
        ]
        return pl.pallas_call(
            functools.partial(_fused_kernel, n_y),
            out_shape=jax.ShapeDtypeStruct((B, o + i), x.dtype),
            grid_spec=pltpu.PrefetchScalarGridSpec(
                num_scalar_prefetch=0,
                grid=(n_y + n_x,),
                in_specs=in_specs,
                out_specs=pl.BlockSpec((B, tile_o), lambda j: (0, j)),
            ),
            compiler_params=compiler_params,
        )(x, w_p, g_p, b_p, x)

    # Fallback (o not a multiple of 128): kernel emits lane-padded y, wrapper
    # slices padding off and concatenates the pass-through.
    y_pad = pl.pallas_call(
        _plain_kernel,
        out_shape=jax.ShapeDtypeStruct((B, o_pad), x.dtype),
        grid_spec=pltpu.PrefetchScalarGridSpec(
            num_scalar_prefetch=0,
            grid=(n_y,),
            in_specs=base_in_specs,
            out_specs=pl.BlockSpec((B, tile_o), lambda j: (0, j)),
        ),
        compiler_params=compiler_params,
    )(x, w_p, g_p, b_p)
    return jnp.concatenate([y_pad[:, :o], x], axis=1)


# --------------------------------------------------------------------------
# Pure-JAX reference mirroring torch semantics (training-mode BN, with bias).
# --------------------------------------------------------------------------
def residual_reference(x, w_t, bias, gamma, beta, matmul_dtype=jnp.float32):
    h = jnp.dot(x.astype(matmul_dtype), w_t.astype(matmul_dtype),
                preferred_element_type=jnp.float32) + bias
    mean = jnp.mean(h, axis=0)
    var = jnp.mean((h - mean) ** 2, axis=0)
    y = (h - mean) * jax.lax.rsqrt(var + BN_EPS) * gamma + beta
    y = jnp.maximum(y, 0.0)
    return jnp.concatenate([y, x], axis=1)


if __name__ == "__main__":
    key = jax.random.PRNGKey(0)

    def make_case(k, B, I, O):
        k_x, k_w, k_b, k_g, k_be = jax.random.split(k, 5)
        x = jax.random.normal(k_x, (B, I), dtype=jnp.float32)
        bound = 1.0 / jnp.sqrt(jnp.float32(I))
        w = jax.random.uniform(k_w, (O, I), minval=-bound, maxval=bound)   # torch layout
        w_t = jnp.transpose(w)                                             # (i, o)
        bias = jax.random.uniform(k_b, (O,), minval=-bound, maxval=bound)
        gamma = 1.0 + 0.1 * jax.random.normal(k_g, (O,), dtype=jnp.float32)
        beta = 0.1 * jax.random.normal(k_be, (O,), dtype=jnp.float32)
        return x, w_t, bias, gamma, beta

    k1, k2 = jax.random.split(key)
    cases = (
        (16, 256, 256, k1),   # CTGAN-like: fused (o % 128 == 0) path, small-B stats
        (128, 96, 192, k2),   # fallback path (o % 128 != 0), MXU batch-stats path
    )
    for B, I, O, kk in cases:
        x, w_t, bias, gamma, beta = make_case(kk, B, I, O)
        params = prepare_residual_params(w_t, bias, gamma, beta)   # hoisted setup
        fwd = jax.jit(lambda xx, p=params: residual_forward(xx, p))

        out = jax.block_until_ready(fwd(x))
        assert out.shape == (B, O + I), out.shape

        # Tight check vs a matched-precision (bf16-matmul) reference.
        ref_bf16 = residual_reference(x, w_t, bias, gamma, beta,
                                      matmul_dtype=jnp.bfloat16)
        assert jnp.allclose(out, ref_bf16, atol=2e-3, rtol=2e-3), \
            f"mismatch vs bf16-matmul reference (B={B}, I={I}, O={O})"

        # Loose check vs the pure-f32 torch-semantics reference.
        ref_f32 = residual_reference(x, w_t, bias, gamma, beta)
        assert jnp.allclose(out, ref_f32, atol=6e-2, rtol=6e-2), \
            f"mismatch vs f32 reference (B={B}, I={I}, O={O})"

    print("KERNEL_OK")
</pallas_src>

<mosaic_0001>
module attributes {stable_mosaic.version = 11 : i64} {
  func.func @_fused_kernel(%arg0: i32, %arg1: memref<16x256xf32, #tpu.memory_space<vmem>>, %arg2: memref<256x256xbf16, #tpu.memory_space<vmem>>, %arg3: memref<1x256xf32, #tpu.memory_space<vmem>>, %arg4: memref<1x256xf32, #tpu.memory_space<vmem>>, %arg5: memref<16x256xf32, #tpu.memory_space<vmem>>, %arg6: memref<16x256xf32, #tpu.memory_space<vmem>>) attributes {dimension_semantics = [#tpu.dimension_semantics<parallel>], iteration_bounds = array<i64: 2>, scalar_prefetch = 0 : i64, scratch_operands = 0 : i64, tpu.core_type = #tpu.core_type<tc>, window_params = [{pipeline_mode = #tpu.pipeline_mode<synchronous>, transform_indices = @transform_0, window_bounds = array<i64: 16, 256>}, {transform_indices = @transform_1, window_bounds = array<i64: 256, 256>}, {transform_indices = @transform_2, window_bounds = array<i64: 1, 256>}, {transform_indices = @transform_3, window_bounds = array<i64: 1, 256>}, {transform_indices = @transform_4, window_bounds = array<i64: 16, 256>}, {transform_indices = @transform_5, window_bounds = array<i64: 16, 256>}]} {
    %c1_i32 = arith.constant 1 : i32
    %0 = arith.cmpi slt, %arg0, %c1_i32 : i32
    %1 = arith.extui %0 : i1 to i32
    %c0_i32 = arith.constant 0 : i32
    %2 = arith.cmpi ne, %1, %c0_i32 : i32
    scf.if %2 {
      %c0 = arith.constant 0 : index
      %c0_2 = arith.constant 0 : index
      %6 = vector.load %arg1[%c0, %c0_2] : memref<16x256xf32, #tpu.memory_space<vmem>>, vector<16x256xf32>
      %c0_3 = arith.constant 0 : index
      %c0_4 = arith.constant 0 : index
      %7 = vector.load %arg2[%c0_3, %c0_4] : memref<256x256xbf16, #tpu.memory_space<vmem>>, vector<256x256xbf16>
      %8 = arith.truncf %6 : vector<16x256xf32> to vector<16x256xbf16>
      %cst = arith.constant dense<0.000000e+00> : vector<16x256xf32>
      %9 = tpu.matmul %8, %7, %cst {dimension_numbers = #tpu.dot_dimension_numbers<[1], [0], [0], [1], [0, 0, 1, 1], [], []>} : vector<16x256xbf16>, vector<256x256xbf16>, vector<16x256xf32> -> vector<16x256xf32>
      %cst_5 = arith.constant dense<0.000000e+00> : vector<256xf32>
      %10 = vector.multi_reduction <add>, %9, %cst_5 [0] : vector<16x256xf32> to vector<256xf32>
      %11 = vector.shape_cast %10 : vector<256xf32> to vector<1x256xf32>
      %cst_6 = arith.constant 1.600000e+01 : f32
      %12 = vector.broadcast %cst_6 : f32 to vector<1x256xf32>
      %13 = arith.divf %11, %12 : vector<1x256xf32>
      %14 = vector.broadcast %13 : vector<1x256xf32> to vector<16x256xf32>
      %15 = arith.subf %9, %14 : vector<16x256xf32>
      %16 = arith.mulf %15, %15 : vector<16x256xf32>
      %cst_7 = arith.constant dense<0.000000e+00> : vector<256xf32>
      %17 = vector.multi_reduction <add>, %16, %cst_7 [0] : vector<16x256xf32> to vector<256xf32>
      %18 = vector.shape_cast %17 : vector<256xf32> to vector<1x256xf32>
      %cst_8 = arith.constant 1.600000e+01 : f32
      %19 = vector.broadcast %cst_8 : f32 to vector<1x256xf32>
      %20 = arith.divf %18, %19 : vector<1x256xf32>
      %c0_9 = arith.constant 0 : index
      %c0_10 = arith.constant 0 : index
      %21 = vector.load %arg3[%c0_9, %c0_10] : memref<1x256xf32, #tpu.memory_space<vmem>>, vector<1x256xf32>
      %cst_11 = arith.constant 9.99999974E-6 : f32
      %22 = vector.broadcast %cst_11 : f32 to vector<1x256xf32>
      %23 = arith.addf %20, %22 : vector<1x256xf32>
      %24 = math.rsqrt %23 : vector<1x256xf32>
      %25 = arith.mulf %21, %24 : vector<1x256xf32>
      %26 = vector.broadcast %25 : vector<1x256xf32> to vector<16x256xf32>
      %27 = arith.mulf %15, %26 : vector<16x256xf32>
      %c0_12 = arith.constant 0 : index
      %c0_13 = arith.constant 0 : index
      %28 = vector.load %arg4[%c0_12, %c0_13] : memref<1x256xf32, #tpu.memory_space<vmem>>, vector<1x256xf32>
      %29 = vector.broadcast %28 : vector<1x256xf32> to vector<16x256xf32>
      %30 = arith.addf %27, %29 : vector<16x256xf32>
      %cst_14 = arith.constant 0.000000e+00 : f32
      %31 = vector.broadcast %cst_14 : f32 to vector<16x256xf32>
      %32 = arith.maximumf %30, %31 : vector<16x256xf32>
      %c0_15 = arith.constant 0 : index
      %c0_16 = arith.constant 0 : index
      %33 = vector.load %arg6[%c0_15, %c0_16] : memref<16x256xf32, #tpu.memory_space<vmem>>, vector<16x256xf32>
      tpu.vector_store %arg6[%c0_15, %c0_16], %32 {strides = array<i32>} : memref<16x256xf32, #tpu.memory_space<vmem>>, vector<16x256xf32>,
    } else {
    }
    %c1_i32_0 = arith.constant 1 : i32
    %3 = arith.cmpi sge, %arg0, %c1_i32_0 : i32
    %4 = arith.extui %3 : i1 to i32
    %c0_i32_1 = arith.constant 0 : i32
    %5 = arith.cmpi ne, %4, %c0_i32_1 : i32
    scf.if %5 {
      %c0 = arith.constant 0 : index
      %c0_2 = arith.constant 0 : index
      %6 = vector.load %arg5[%c0, %c0_2] : memref<16x256xf32, #tpu.memory_space<vmem>>, vector<16x256xf32>
      %c0_3 = arith.constant 0 : index
      %c0_4 = arith.constant 0 : index
      %7 = vector.load %arg6[%c0_3, %c0_4] : memref<16x256xf32, #tpu.memory_space<vmem>>, vector<16x256xf32>
      tpu.vector_store %arg6[%c0_3, %c0_4], %6 {strides = array<i32>} : memref<16x256xf32, #tpu.memory_space<vmem>>, vector<16x256xf32>,
    } else {
    }
    return
  }
  func.func @transform_0(%arg0: i32) -> (i32, i32) {
    %c0_i32 = arith.constant 0 : i32
    %c0_i32_0 = arith.constant 0 : i32
    %c0_i32_1 = arith.constant 0 : i32
    return %c0_i32, %c0_i32_0 : i32, i32
  }
  func.func @transform_1(%arg0: i32) -> (i32, i32) {
    %c0_i32 = arith.constant 0 : i32
    %0 = arith.minsi %arg0, %c0_i32 : i32
    %c0_i32_0 = arith.constant 0 : i32
    %c0_i32_1 = arith.constant 0 : i32
    return %c0_i32_0, %0 : i32, i32
  }
  func.func @transform_2(%arg0: i32) -> (i32, i32) {
    %c0_i32 = arith.constant 0 : i32
    %0 = arith.minsi %arg0, %c0_i32 : i32
    %c0_i32_0 = arith.constant 0 : i32
    %c0_i32_1 = arith.constant 0 : i32
    return %c0_i32_0, %0 : i32, i32
  }
  func.func @transform_3(%arg0: i32) -> (i32, i32) {
    %c0_i32 = arith.constant 0 : i32
    %0 = arith.minsi %arg0, %c0_i32 : i32
    %c0_i32_0 = arith.constant 0 : i32
    %c0_i32_1 = arith.constant 0 : i32
    return %c0_i32_0, %0 : i32, i32
  }
  func.func @transform_4(%arg0: i32) -> (i32, i32) {
    %c1_i32 = arith.constant 1 : i32
    %0 = arith.subi %arg0, %c1_i32 : i32
    %c0_i32 = arith.constant 0 : i32
    %1 = arith.maxsi %0, %c0_i32 : i32
    %c0_i32_0 = arith.constant 0 : i32
    %c0_i32_1 = arith.constant 0 : i32
    return %c0_i32_0, %1 : i32, i32
  }
  func.func @transform_5(%arg0: i32) -> (i32, i32) {
    %c0_i32 = arith.constant 0 : i32
    %c0_i32_0 = arith.constant 0 : i32
    return %c0_i32, %arg0 : i32, i32
  }
}

</mosaic_0001>

<bundles_post_ra>
// kernel: _lambda_.1
= control target key start
LH: loop header
LB: loop body
LE: loop exit
PB: predicated region body
PF: predicated region fallthrough
CT: control target
= control target key end

     0   :  { %10 = vsyncpa [#allocation3], 0  ;;  %s1261_s0 = inlined_call_operand.vmem [shape: f32[16,256], index: 0, kind: input, shape index: {}, may-alias: {0,4}]   ;;  %s1262_s1 = inlined_call_operand.vmem [shape: bf16[256,256], index: 1, kind: input, shape index: {}]   ;;  %s1263_s2 = inlined_call_operand.vmem [shape: f32[1,256], index: 2, kind: input, shape index: {}]   ;;  %s1264_s3 = inlined_call_operand.vmem [shape: f32[1,256], index: 3, kind: input, shape index: {}]   ;;  %s1265_s4 = inlined_call_operand.vmem [shape: f32[16,256], index: 4, kind: input, shape index: {}, may-alias: {0,4}]   ;;  %s1266_s5 = inlined_call_operand.hbm [shape: f32[16,512], index: 5, kind: output, shape index: {}]  }
   0x1   :  { %12 = vsyncpa [#allocation3 + $0x1], 0  ;;  %s1064_s18 = smov 0   ;;  %s1066_s19 = smov 0  }
   0x2   :  { %s1068_s20 = smov 0   ;;  %s1070_s21 = smov 0  }
   0x3 LB: > { %1269 = sst [smem:[#allocation5_spill]] %s1023_s20  ;;  %s1085_s22 = sadd.s32 4294967295, %s1027_s21   ;;  %s1027_s21 = sphi %s1070_s21, %s1278_s21   ;;  %s1023_s20 = sphi %s1068_s20, %s1275_s20   ;;  %s1019_s19 = sphi %s1066_s19, %s1277_s19   ;;  %s1015_s18 = sphi %s1064_s18, %s1276_s18  }
   0x4   : > { %s816_s23 = sadd.s32 4294967294, %s1027_s21   ;;  %s1089_s24 = sadd.s32 1, %s1027_s21  }
   0x5   : > { %s168_s25 = sadd.s32 1, %s1023_s20  ;;  %s165_s26 = ssub.s32 %s1027_s21, %s1089_s24 }
   0x6   : > { %p178_p0 = scmp.ne.s32.totalorder %s1023_s20, %s1019_s19  ;;  %p166_p1 = scmp.eq.s32.totalorder %s165_s26, 0 }
   0x7   : > { %p179_p2 = scmp.eq.s32.totalorder %s1085_s22, 1  ;;  %p184_p3 = scmp.ne.s32.totalorder %s1019_s19, %s1015_s18 }
   0x8   : > { %p185_p4 = scmp.eq.s32.totalorder %s816_s23, 1  ;;  %p821_p7 = scmp.ge.s32.totalorder %s1027_s21, 1 }
   0x9   : > { %s1100_s27 = scalar_select %p166_p1, %s1023_s20, %s168_s25  }
   0xa   : > { %p1102_p5 = por %p179_p2, %p178_p0  ;;  %p1106_p6 = por %p185_p4, %p184_p3 }
   0xb   : > { %1270 = sst [smem:[#allocation6_spill]] %s1100_s27  ;;  %p258_p8 = scmp.lt.s32.totalorder %s1027_s21, 3 }
   0xd   : > { %p259_p9 = pnand %p821_p7, %p258_p8 }
   0xe   : > { %s1267_s30 = sand.u32 (!%p259_p9), 1, %s1019_s19   ;;  %p308_p10 = scmp.lt.s32.totalorder (!%p259_p9), %s1085_s22, 0 }
   0xf   : > { %262 = sbr.rel (%p259_p9) target bundleno = 413 (0x19d), region = 40  ;;  %s822_s6 = sshll.u32 (!%p259_p9), %s1267_s30, 5 }
  0x10   : > { %s827_s7 = sadd.s32 (!%p259_p9), 4294967295, %s1085_s22  ;;  %s1139_s20 = scalar_lea.vmem (!%p259_p9), [#allocation2], %s822_s6 }
  0x11   : > { %p337_p11 = scmp.gt.s32.totalorder (!%p259_p9), %s827_s7, 0  ;;  %p830_p0 = scmp.ge.s32.totalorder (!%p259_p9), %s1085_s22, 1 }
  0x16   : > { %s309_s8 = scalar_select %p308_p10, %s1085_s22, 0 }
  0x17   : > { %s1280_s7 = smov (!%p337_p11, %s827_s7), 0  ;;  %v354_v13 = vld [vmem:[%s1261_s0 + $0x8] sm:$0xff] (!%p830_p0)  ;;  %v356_v14 = vld [vmem:[%s1261_s0 + $0x18] sm:$0xff] (!%p830_p0)  ;;  %v353_v35 = vld [vmem:[%s1261_s0] sm:$0xff] (!%p830_p0) }
  0x18   : > { %s823_s9 = sshll.u32 %s309_s8, 1  ;;  %s828_s10 = sshll.u32 %s1280_s7, 1  ;;  %v390_v15 = vpack.c.bf16 (!%p830_p0), %v356_v14, %v354_v13  ;;  %v355_v36 = vld [vmem:[%s1261_s0 + $0x10] sm:$0xff] (!%p830_p0) }
  0x19   : > { %p311_p12 = scmp.lt.s32.totalorder %s823_s9, 1  ;;  %p340_p13 = scmp.lt.s32.totalorder %s828_s10, 1  ;;  %v389_v37 = vpack.c.bf16 (!%p830_p0), %v355_v36, %v353_v35 }
  0x1a   : > { %352 = sbr.rel (%p830_p0) target bundleno = 377 (0x179), region = 44  ;;  %583 = vmatprep.mubr.bf16.mxu0 (!%p830_p0), %v390_v15 }
  0x1b   : > { %s1282_s9 = smov (!%p311_p12, %s823_s9), 1  ;;  %s1284_s10 = smov (!%p340_p13, %s828_s10), 1 }
  0x1c   : > { %s824_s11 = sshll.u32 %s1282_s9, 2  ;;  %s323_s14 = scalar_lea.vmem %s1263_s2, %s1282_s9 }
  0x1d   : > { %s1128_s17 = scalar_lea.vmem %s1262_s1, %s824_s11  ;;  %s332_s26 = scalar_lea.vmem %s1264_s3, %s1282_s9 }
  0x1e   : > { %s829_s7 = sshll.u32 %s1284_s10, 3  ;;  %v913_v0 = vld [vmem:[%s1128_s17 + $0x4] ss:$8 sps:$4 sm:$0xff] (!%p830_p0)   ;;  %v915_v1 = vld [vmem:[%s1128_s17] ss:$8 sps:$4 sm:$0xff] (!%p830_p0)  }
  0x1f   : > { %s1137_s27 = scalar_lea.vmem %s1265_s4, %s829_s7  ;;  %551 = vmatprep.subr.bf16.mxu0 (!%p830_p0), %v913_v0  ;;  %v916_v2 = vld [vmem:[%s1128_s17 + $0x14] ss:$8 sps:$4 sm:$0xff] (!%p830_p0)   ;;  %v918_v3 = vld [vmem:[%s1128_s17 + $0x10] ss:$8 sps:$4 sm:$0xff] (!%p830_p0)   ;;  %v919_v4 = vld [vmem:[%s1128_s17 + $0x24] ss:$8 sps:$4 sm:$0xff] (!%p830_p0)  }
  0x20   : > { %552 = vmatpush1.bf16.msra.mxu0 (!%p830_p0), %v915_v1  ;;  %v921_v5 = vld [vmem:[%s1128_s17 + $0x20] ss:$8 sps:$4 sm:$0xff] (!%p830_p0)   ;;  %v922_v6 = vld [vmem:[%s1128_s17 + $0x34] ss:$8 sps:$4 sm:$0xff] (!%p830_p0)   ;;  %v924_v7 = vld [vmem:[%s1128_s17 + $0x30] ss:$8 sps:$4 sm:$0xff] (!%p830_p0)  }
  0x21   : > { %553 = vmatprep.subr.bf16.mxu0 %v916_v2  ;;  %v925_v8 = vld [vmem:[%s1128_s17 + $0x44] ss:$8 sps:$4 sm:$0xff]   ;;  %v927_v9 = vld [vmem:[%s1128_s17 + $0x40] ss:$8 sps:$4 sm:$0xff]   ;;  %v928_v10 = vld [vmem:[%s1128_s17 + $0x54] ss:$8 sps:$4 sm:$0xff]  }
  0x22   : > { %v930_v11 = vld [vmem:[%s1128_s17 + $0x50] ss:$8 sps:$4 sm:$0xff]   ;;  %v931_v12 = vld [vmem:[%s1128_s17 + $0x64] ss:$8 sps:$4 sm:$0xff]   ;;  %v933_v16 = vld [vmem:[%s1128_s17 + $0x60] ss:$8 sps:$4 sm:$0xff]  }
  0x23   : > { %v934_v17 = vld [vmem:[%s1128_s17 + $0x74] ss:$8 sps:$4 sm:$0xff]   ;;  %v936_v18 = vld [vmem:[%s1128_s17 + $0x70] ss:$8 sps:$4 sm:$0xff]   ;;  %v937_v19 = vld [vmem:[%s1128_s17 + $0x84] ss:$8 sps:$4 sm:$0xff]  }
  0x24   : > { %554 = vmatpush1.bf16.msra.mxu0 %v918_v3  ;;  %v939_v20 = vld [vmem:[%s1128_s17 + $0x80] ss:$8 sps:$4 sm:$0xff]   ;;  %v940_v21 = vld [vmem:[%s1128_s17 + $0x94] ss:$8 sps:$4 sm:$0xff]   ;;  %v942_v22 = vld [vmem:[%s1128_s17 + $0x90] ss:$8 sps:$4 sm:$0xff]  }
  0x25   : > { %555 = vmatprep.subr.bf16.mxu0 %v919_v4  ;;  %v943_v23 = vld [vmem:[%s1128_s17 + $0xa4] ss:$8 sps:$4 sm:$0xff]   ;;  %v945_v24 = vld [vmem:[%s1128_s17 + $0xa0] ss:$8 sps:$4 sm:$0xff]   ;;  %v946_v25 = vld [vmem:[%s1128_s17 + $0xb4] ss:$8 sps:$4 sm:$0xff]  }
  0x26   : > { %v948_v26 = vld [vmem:[%s1128_s17 + $0xb0] ss:$8 sps:$4 sm:$0xff]   ;;  %v949_v27 = vld [vmem:[%s1128_s17 + $0xc4] ss:$8 sps:$4 sm:$0xff]   ;;  %v951_v28 = vld [vmem:[%s1128_s17 + $0xc0] ss:$8 sps:$4 sm:$0xff]  }
  0x27   : > { %v952_v29 = vld [vmem:[%s1128_s17 + $0xd4] ss:$8 sps:$4 sm:$0xff]   ;;  %v954_v30 = vld [vmem:[%s1128_s17 + $0xd0] ss:$8 sps:$4 sm:$0xff]   ;;  %v955_v31 = vld [vmem:[%s1128_s17 + $0xe4] ss:$8 sps:$4 sm:$0xff]  }
  0x28   : > { %556 = vmatpush1.bf16.msra.mxu0 %v921_v5  ;;  %v957_v32 = vld [vmem:[%s1128_s17 + $0xe0] ss:$8 sps:$4 sm:$0xff]   ;;  %v958_v33 = vld [vmem:[%s1128_s17 + $0xf4] ss:$8 sps:$4 sm:$0xff]   ;;  %v960_v34 = vld [vmem:[%s1128_s17 + $0xf0] ss:$8 sps:$4 sm:$0xff]  }
  0x29   : > { %557 = vmatprep.subr.bf16.mxu0 %v922_v6 }
  0x2c   : > { %558 = vmatpush1.bf16.msra.mxu0 %v924_v7 }
  0x2d   : > { %559 = vmatprep.subr.bf16.mxu0 %v925_v8 }
  0x30   : > { %560 = vmatpush1.bf16.msra.mxu0 %v927_v9 }
  0x31   : > { %561 = vmatprep.subr.bf16.mxu0 %v928_v10 }
  0x34   : > { %562 = vmatpush1.bf16.msra.mxu0 %v930_v11 }
  0x35   : > { %563 = vmatprep.subr.bf16.mxu0 %v931_v12 }
  0x38   : > { %564 = vmatpush1.bf16.msra.mxu0 %v933_v16 }
  0x39   : > { %565 = vmatprep.subr.bf16.mxu0 %v934_v17 }
  0x3c   : > { %566 = vmatpush1.bf16.msra.mxu0 %v936_v18 }
  0x3d   : > { %567 = vmatprep.subr.bf16.mxu0 %v937_v19 }
  0x40   : > { %568 = vmatpush1.bf16.msra.mxu0 %v939_v20  ;;  %v1029_v20 = vmov 1966171168  }
  0x41   : > { %569 = vmatprep.subr.bf16.mxu0 %v940_v21  ;;  %v644_v21 = vunpack.c.l.s4 %v1029_v20 }
  0x44   : > { %570 = vmatpush1.bf16.msra.mxu0 %v942_v22  ;;  %v646_v22 = vlaneseq }
  0x45   : > { %571 = vmatprep.subr.bf16.mxu0 %v943_v23  ;;  %v645_v23 = vunpack.c.0.s8 %v644_v21 }
  0x48   : > { %572 = vmatpush1.bf16.msra.mxu0 %v945_v24  ;;  %v647_v24 = vshrl.u32 %v646_v22, 7 }
  0x49   : > { %573 = vmatprep.subr.bf16.mxu0 %v946_v25 }
  0x4c   : > { %574 = vmatpush1.bf16.msra.mxu0 %v948_v26  ;;  %v648_v26 = vsub.s32 %v645_v23, %v647_v24 }
  0x4d   : > { %575 = vmatprep.subr.bf16.mxu0 %v949_v27 }
  0x50   : > { %576 = vmatpush1.bf16.msra.mxu0 %v951_v28 }
  0x51   : > { %577 = vmatprep.subr.bf16.mxu0 %v952_v29 }
  0x54   : > { %578 = vmatpush1.bf16.msra.mxu0 %v954_v30  ;;  %v635_v30 = vld [vmem:[%s323_s14] sm:$0x3] }
  0x55   : > { %579 = vmatprep.subr.bf16.mxu0 %v955_v31 }
  0x58   : > { %580 = vmatpush1.bf16.msra.mxu0 %v957_v32  ;;  %v662_v32 = vsub.s32 0, %v647_v24 }
  0x59   : > { %581 = vmatprep.subr.bf16.mxu0 %v958_v33  ;;  %v666_v33 = vsub.s32 1, %v647_v24 }
  0x5c   : > { %582 = vmatpush1.bf16.msra.mxu0 %v960_v34  ;;  %v674_v34 = vld [vmem:[%s332_s26] sm:$0x3] }
  0x5f   : > { %584 = vmatmul.mubr.bf16.vlgmr.msra.gmra.mrb[0].mxu0 %v389_v37 }
 0x132   : > { %v585_v38 = vpop.f32.mrb[0].mxu0 }
 0x133   : > { %v587_v39 = vpop.f32.mrb[1].mxu0 }
 0x134   : > { %v589_v40 = vpop.f32.mrb[2].mxu0 }
 0x135   : > { %v594_v41 = vadd.f32 %v589_v40, %v585_v38  ;;  %v591_v42 = vpop.f32.mrb[3].mxu0 }
 0x136   : > { %v601_v43 = vadd.f32 %v591_v42, %v587_v39 }
 0x137   : > { %v595_v44 = vrot.slane %v594_v41, 4 }
 0x138   : > { %v602_v45 = vrot.slane %v601_v43, 4 }
 0x139   : > { %v596_v46 = vadd.f32 %v595_v44, %v594_v41 }
 0x13a   : > { %v603_v47 = vadd.f32 %v602_v45, %v601_v43 }
 0x13b   : > { %v597_v48 = vrot.slane %v596_v46, 2 }
 0x13c   : > { %v604_v49 = vrot.slane %v603_v47, 2 }
 0x13d   : > { %v598_v50 = vadd.f32 %v597_v48, %v596_v46 }
 0x13e   : > { %v605_v51 = vadd.f32 %v604_v49, %v603_v47 }
 0x13f   : > { %v599_v52 = vrot.slane %v598_v50, 1 }
 0x140   : > { %v606_v53 = vrot.slane %v605_v51, 1 }
 0x141   : > { %v600_v54 = vadd.f32 %v599_v52, %v598_v50 }
 0x142   : > { %v607_v55 = vadd.f32 %v606_v53, %v605_v51 }
 0x143   : > { %v609_v56 = vmul.f32 0.0625, %v600_v54 }
 0x144   : > { %v610_v57 = vmul.f32 0.0625, %v607_v55 }
 0x145   : > { %v611_v58 = vsub.f32 %v585_v38, %v609_v56  ;;  %v613_v59 = vsub.f32 %v589_v40, %v609_v56  ;;  %v679_v38 = vrot.slane %v674_v34, %v662_v32 }
 0x146   : > { %v612_v60 = vsub.f32 %v587_v39, %v610_v57  ;;  %v614_v61 = vsub.f32 %v591_v42, %v610_v57  ;;  %v683_v39 = vrot.slane %v674_v34, %v666_v33 }
 0x147   : > { %v615_v62 = vmul.f32 %v611_v58, %v611_v58  ;;  %v617_v63 = vmul.f32 %v613_v59, %v613_v59 }
 0x148   : > { %v616_v0 = vmul.f32 %v612_v60, %v612_v60  ;;  %v618_v1 = vmul.f32 %v614_v61, %v614_v61 }
 0x149   : > { %v619_v2 = vadd.f32 %v617_v63, %v615_v62 }
 0x14a   : > { %v626_v3 = vadd.f32 %v618_v1, %v616_v0 }
 0x14b   : > { %v620_v4 = vrot.slane %v619_v2, 4 }
 0x14c   : > { %v627_v5 = vrot.slane %v626_v3, 4 }
 0x14d   : > { %v621_v6 = vadd.f32 %v620_v4, %v619_v2 }
 0x14e   : > { %v628_v7 = vadd.f32 %v627_v5, %v626_v3 }
 0x14f   : > { %v622_v8 = vrot.slane %v621_v6, 2 }
 0x150   : > { %v629_v9 = vrot.slane %v628_v7, 2 }
 0x151   : > { %v623_v10 = vadd.f32 %v622_v8, %v621_v6 }
 0x152   : > { %v630_v11 = vadd.f32 %v629_v9, %v628_v7 }
 0x153   : > { %v624_v12 = vrot.slane %v623_v10, 1 }
 0x154   : > { %v631_v13 = vrot.slane %v630_v11, 1 }
 0x155   : > { %v625_v14 = vadd.f32 %v624_v12, %v623_v10 }
 0x156   : > { %v632_v15 = vadd.f32 %v631_v13, %v630_v11 }
 0x157   : > { %v633_v16 = vmul.f32 0.0625, %v625_v14 }
 0x158   : > { %v634_v17 = vmul.f32 0.0625, %v632_v15 }
 0x159   : > { %v636_v18 = vadd.f32 1e-05, %v633_v16 }
 0x15a   : > { %v637_v19 = vadd.f32 1e-05, %v634_v17 }
 0x15b   : > { %961 = vrsqrt.f32 %v636_v18 }
 0x15c   : > { %963 = vrsqrt.f32 %v637_v19 }
 0x165   : > { %v962_v25 = vpop.eup %961 }
 0x166   : > { %v964_v27 = vpop.eup %963 }
 0x167   : > { %v642_v28 = vcombine.low %v962_v25, %v964_v27 }
 0x169   : > { %v649_v29 = vrot.slane %v642_v28, %v648_v26 }
 0x16b   : > { %v656_v31 = vrot.slane %v649_v29, %v648_v26 }
 0x16d   : > { %v658_v35 = vmul.f32 %v656_v31, %v635_v30 }
 0x16f   : > { %v663_v36 = vrot.slane %v658_v35, %v662_v32  ;;  %v667_v37 = vrot.slane %v658_v35, %v666_v33 }
 0x171   : > { %v670_v40 = vmul.f32 %v663_v36, %v611_v58  ;;  %v671_v41 = vmul.f32 %v667_v37, %v612_v60  ;;  %v672_v42 = vmul.f32 %v663_v36, %v613_v59  ;;  %v673_v43 = vmul.f32 %v667_v37, %v614_v61 }
 0x173   : > { %v686_v44 = vadd.f32 %v679_v38, %v670_v40  ;;  %v687_v45 = vadd.f32 %v683_v39, %v671_v41  ;;  %v688_v46 = vadd.f32 %v679_v38, %v672_v42  ;;  %v689_v47 = vadd.f32 %v683_v39, %v673_v43 }
 0x175   : > { %v690_v48 = vmax.f32 %v686_v44, 0.0  ;;  %v691_v49 = vmax.f32 %v687_v45, 0.0  ;;  %v692_v50 = vmax.f32 %v688_v46, 0.0  ;;  %v693_v51 = vmax.f32 %v689_v47, 0.0 }
 0x177   : > { %694 = vst [vmem:[%s1139_s20] sm:$0xff] %v690_v48  ;;  %695 = vst [vmem:[%s1139_s20 + $0x8] sm:$0xff] %v691_v49 }
 0x178   : > { %696 = vst [vmem:[%s1139_s20 + $0x10] sm:$0xff] %v692_v50  ;;  %697 = vst [vmem:[%s1139_s20 + $0x18] sm:$0xff] %v693_v51 }
 0x179 PF: > { %p863_p1 = scmp.lt.s32.totalorder %s1085_s22, 1 }
 0x17a   : > { %v702_v52 = vld [vmem:[%s1137_s27] sm:$0xff] (!%p863_p1)  ;;  %v703_v53 = vld [vmem:[%s1137_s27 + $0x8] sm:$0xff] (!%p863_p1)  ;;  %v704_v54 = vld [vmem:[%s1137_s27 + $0x10] sm:$0xff] (!%p863_p1) }
 0x17b   : > { %701 = sbr.rel (%p863_p1) target bundleno = 386 (0x182), region = 48  ;;  %706 = vst [vmem:[%s1139_s20] sm:$0xff] (!%p863_p1), %v702_v52  ;;  %707 = vst [vmem:[%s1139_s20 + $0x8] sm:$0xff] (!%p863_p1), %v703_v53  ;;  %v705_v55 = vld [vmem:[%s1137_s27 + $0x18] sm:$0xff] (!%p863_p1) }
 0x17c   : > { %708 = vst [vmem:[%s1139_s20 + $0x10] sm:$0xff] (!%p863_p1), %v704_v54  ;;  %709 = vst [vmem:[%s1139_s20 + $0x18] sm:$0xff] (!%p863_p1), %v705_v55 }
 0x182 PF: > { %s869_s9 = sshll.u32 %s1085_s22, 8  ;;  %s724_s30 = sshll.u32 %s1139_s20, 4  ;;  %s1216_s30 = int_to_ptr.vmem [resolvable:$true] %s724_s30 }
 0x183   : > { %s1213_s8 = scalar_lea.hbm %s1266_s5, %s869_s9  ;;  %s1273_s6 = sand.u32 1, %s1019_s19  }
 0x184   : > { %s1220_s27 = scalar_lea.sflag [#allocation3], %s1273_s6  ;;  %s965_s10 = scalar_lea.vmem %s1216_s30, 512 }
 0x185   : > { %p966_p2 = scmp.ne.s32.totalorder %s1216_s30, %s965_s10  ;;  %s1030_s22 = smov [#allocation2]  }
 0x186   : > { %s969_s11 = sshll.u32 %s1030_s22, 4  ;;  %s970_s11 = int_to_ptr.vmem [resolvable:$false] %s969_s11 }
 0x187   : > { %p967_p3 = pnand %p966_p2, %p1102_p5  ;;  %s971_s12 = scalar_lea.vmem %s970_s11, 1024 }
 0x188   : > { %p972_p7 = scmp.lt.s32.totalorder %s1216_s30, %s970_s11  ;;  %p973_p8 = scmp.lt.s32.totalorder %s971_s12, %s965_s10 }
 0x189   : > { %p968_p4 = pneg %p967_p3 }
 0x18a   : > { %p974_p9 = por %p973_p8, %p972_p7 }
 0x18c   : > { %p975_p10 = pnand %p974_p9, %p968_p4 }
 0x18e   : > { %978 = shalt.err (!%p975_p10)
}
 0x18f   : > { %s979_s20 = scalar_lea.hbm %s1213_s8, 512  ;;  %s983_s16 = scalar_lea.hbm %s1266_s5, 1024 }
 0x190   : > { %p980_p11 = scmp.ne.s32.totalorder %s1213_s8, %s979_s20  ;;  %p984_p0 = scmp.lt.u32.totalorder %s1213_s8, %s1266_s5 }
 0x191   : > { %p985_p1 = scmp.lt.u32.totalorder %s983_s16, %s979_s20  ;;  %p987_p3 = scmp.lt.u32.totalorder %s979_s20, %s1213_s8 }
 0x192   : > { %p981_p12 = pnand %p980_p11, %p1102_p5 }
 0x193   : > { %p986_p2 = por %p985_p1, %p984_p0 }
 0x194   : > { %p982_p13 = pneg %p981_p12 }
 0x195   : > { %p988_p4 = por %p987_p3, %p986_p2 }
 0x197   : > { %p989_p7 = pnand %p988_p4, %p982_p13 }
 0x199   : > { %992 = shalt.err (!%p989_p7)
}
 0x19a   : > { %s1031_s25 = smov 256   ;;  %s1032_s7 = smov 512  }
 0x19b   : > { %s1033_s9 = smov 16  }
 0x19c   : > { %870 = dma.vmem_to_hbm [thread:$0]  (%p1102_p5), %s1216_s30, 512, %s1213_s8, %s1220_s27, %s1031_s25, %s1032_s7, %s1033_s9  }
 0x19d PF: > { %p876_p8 = scmp.ge.s32.totalorder %s1027_s21, 2  ;;  %s739_s14 = sand.u32 1, %s1015_s18  }
 0x19e   : > { %s740_s26 = scalar_lea.sflag [#allocation3], %s739_s14 }
 0x19f   : > { %p873_p9 = pnand %p876_p8, %p1106_p6 }
 0x1a1   : > { %1010 = dma.done.wait (!%p873_p9), %s740_s26, 512  }
 0x1a2   : > { %1012 = vsyncadd (!%p873_p9), %s740_s26, 4294966784  ;;  %s1274_s6 = sld [smem:[#allocation5_spill]]  ;;  %s1275_s20 = sld [smem:[#allocation6_spill]] }
 0x1a3   : > { %p15_p10 = scmp.ge.s32.totalorder %s1089_s24, 4   ;;  %s1276_s18 = smov %s1019_s19 }
 0x1a4   : > { %s1278_s21 = smov %s1089_s24 }
 0x1a5   :  { %17 = sbr.rel (!%p15_p10) target bundleno = 3 (0x3), region = 92 }
 0x1a8   : > { %s1277_s19 = smov %s1274_s6 }
 0x1ac   :  { %745 = vsyncpa [#allocation3], 1 }
 0x1ad   :  { %747 = vsyncpa [#allocation3 + $0x1], 1 }

</bundles_post_ra>
